<compile_context>
chip_gen: v5e
topology: v5e:2x2
jax: 0.10.0
libtpu: 0.0.40
codegen_flags: <defaults>
</compile_context>

<pallas_src>
import functools

import jax
import jax.numpy as jnp
from jax.experimental import pallas as pl
from jax.experimental.pallas import tpu as pltpu

_EPS = 1e-5  # nn.InstanceNorm1d default


# --------------------------------------------------------------------------- #
# Kernels
# --------------------------------------------------------------------------- #
def _fused_kernel(x1_ref, x2_ref, w_ref, b_ref, o_ref):
    """Full-N-resident path: add + instance-norm + affine in one pass."""
    added = x1_ref[...] + x2_ref[...]                           # (TB, N, E)
    inv_n = 1.0 / added.shape[1]
    mean = jnp.sum(added, axis=1, keepdims=True) * inv_n        # (TB, 1, E)
    msq = jnp.sum(added * added, axis=1, keepdims=True) * inv_n
    var = jnp.maximum(msq - mean * mean, 0.0)                   # biased var, clamp cancellation
    scale = jax.lax.rsqrt(var + _EPS) * w_ref[...][None]        # (TB, 1, E)
    shift = b_ref[...][None] - mean * scale
    o_ref[...] = added * scale + shift


def _stats_kernel(x1_ref, x2_ref, sum_ref, sq_ref, *, seq_len):
    """Large-N path, pass 1: accumulate per-(b,e) sum and sum-of-squares over N chunks."""
    k = pl.program_id(1)

    @pl.when(k == 0)
    def _():
        sum_ref[...] = jnp.zeros_like(sum_ref)
        sq_ref[...] = jnp.zeros_like(sq_ref)

    added = x1_ref[...] + x2_ref[...]                           # (TB, TN, E)
    tn = added.shape[1]
    # Mask rows of a ragged last N-chunk so they do not pollute the statistics.
    row = jax.lax.broadcasted_iota(jnp.int32, added.shape, 1) + k * tn
    added = jnp.where(row < seq_len, added, 0.0)
    sum_ref[...] += jnp.sum(added, axis=1, keepdims=True)
    sq_ref[...] += jnp.sum(added * added, axis=1, keepdims=True)


def _apply_kernel(x1_ref, x2_ref, sum_ref, sq_ref, w_ref, b_ref, o_ref, *, seq_len):
    """Large-N path, pass 2: recompute add, normalize with precomputed stats, affine."""
    added = x1_ref[...] + x2_ref[...]                           # (TB, TN, E)
    inv_n = 1.0 / seq_len
    mean = sum_ref[...] * inv_n                                 # (TB, 1, E)
    var = jnp.maximum(sq_ref[...] * inv_n - mean * mean, 0.0)
    scale = jax.lax.rsqrt(var + _EPS) * w_ref[...][None]
    shift = b_ref[...][None] - mean * scale
    o_ref[...] = added * scale + shift


# --------------------------------------------------------------------------- #
# Tiling / VMEM heuristics
# --------------------------------------------------------------------------- #
def _vmem_config():
    """(vmem_limit_bytes, target_tile_bytes, min_grid_steps) per TPU generation."""
    try:
        kind = jax.devices()[0].device_kind.lower()
    except Exception:
        kind = ""
    if ("v5" in kind) or ("v6" in kind):
        # 128 MiB physical VMEM, 1 TensorCore: bigger tiles, >=2 steps for pipelining.
        return 64 * 1024 * 1024, 4 * 1024 * 1024, 2
    # v7x (64 MiB physical, 2 TensorCores) and unknown chips: conservative limit,
    # >=4 grid steps so each core gets >=2 steps of double-buffered work.
    return 32 * 1024 * 1024, 2 * 1024 * 1024, 4


def _pick_batch_tile(B, per_batch_bytes, target_tile, budget, min_steps):
    # Factor 8 ~= 3 arrays x 2 pipeline buffers + in-kernel `added`/output temporaries.
    cap = max(1, min(target_tile // per_batch_bytes, budget // (8 * per_batch_bytes)))
    tb = max(1, min(B, cap))
    steps_wanted = min(min_steps, B)
    if steps_wanted >= 2:
        tb = min(tb, max(1, B // steps_wanted))
    return max(1, tb)


def _pick_seq_tile(N, E, itemsize, target_tile, budget):
    per_row = E * itemsize
    cap = max(8, min(target_tile // per_row, budget // (8 * per_row)))
    tn = min(N, cap)
    if tn < N:
        tn = max(8, (tn // 8) * 8)   # (8, 128) layout rule: sublane dim multiple of 8
    return tn


# --------------------------------------------------------------------------- #
# Wrappers
# --------------------------------------------------------------------------- #
def _add_norm_fused(x1, x2, w2, b2, tb, vmem_limit):
    B, N, E = x1.shape
    grid = (pl.cdiv(B, tb),)
    return pl.pallas_call(
        _fused_kernel,
        out_shape=jax.ShapeDtypeStruct((B, N, E), x1.dtype),
        grid_spec=pltpu.PrefetchScalarGridSpec(
            num_scalar_prefetch=0,
            grid=grid,
            in_specs=[
                pl.BlockSpec((tb, N, E), lambda i: (i, 0, 0)),
                pl.BlockSpec((tb, N, E), lambda i: (i, 0, 0)),
                pl.BlockSpec((1, E), lambda i: (0, 0)),
                pl.BlockSpec((1, E), lambda i: (0, 0)),
            ],
            out_specs=pl.BlockSpec((tb, N, E), lambda i: (i, 0, 0)),
        ),
        compiler_params=pltpu.CompilerParams(
            dimension_semantics=("parallel",),
            vmem_limit_bytes=vmem_limit,
        ),
    )(x1, x2, w2, b2)


def _add_norm_chunked(x1, x2, w2, b2, tn, vmem_limit):
    """Two-pass path for large N: stats accumulation kernel + normalize kernel."""
    B, N, E = x1.shape
    tb = 1
    grid = (pl.cdiv(B, tb), pl.cdiv(N, tn))

    s, sq = pl.pallas_call(
        functools.partial(_stats_kernel, seq_len=N),
        out_shape=(
            jax.ShapeDtypeStruct((B, 1, E), jnp.float32),
            jax.ShapeDtypeStruct((B, 1, E), jnp.float32),
        ),
        grid_spec=pltpu.PrefetchScalarGridSpec(
            num_scalar_prefetch=0,
            grid=grid,
            in_specs=[
                pl.BlockSpec((tb, tn, E), lambda i, k: (i, k, 0)),
                pl.BlockSpec((tb, tn, E), lambda i, k: (i, k, 0)),
            ],
            out_specs=(
                pl.BlockSpec((tb, 1, E), lambda i, k: (i, 0, 0)),
                pl.BlockSpec((tb, 1, E), lambda i, k: (i, 0, 0)),
            ),
        ),
        compiler_params=pltpu.CompilerParams(
            dimension_semantics=("parallel", "arbitrary"),
            vmem_limit_bytes=vmem_limit,
        ),
    )(x1, x2)

    return pl.pallas_call(
        functools.partial(_apply_kernel, seq_len=N),
        out_shape=jax.ShapeDtypeStruct((B, N, E), x1.dtype),
        grid_spec=pltpu.PrefetchScalarGridSpec(
            num_scalar_prefetch=0,
            grid=grid,
            in_specs=[
                pl.BlockSpec((tb, tn, E), lambda i, k: (i, k, 0)),
                pl.BlockSpec((tb, tn, E), lambda i, k: (i, k, 0)),
                pl.BlockSpec((tb, 1, E), lambda i, k: (i, 0, 0)),
                pl.BlockSpec((tb, 1, E), lambda i, k: (i, 0, 0)),
                pl.BlockSpec((1, E), lambda i, k: (0, 0)),
                pl.BlockSpec((1, E), lambda i, k: (0, 0)),
            ],
            out_specs=pl.BlockSpec((tb, tn, E), lambda i, k: (i, k, 0)),
        ),
        compiler_params=pltpu.CompilerParams(
            dimension_semantics=("parallel", "parallel"),
            vmem_limit_bytes=vmem_limit,
        ),
    )(x1, x2, s, sq, w2, b2)


def add_and_normalize(x1, x2, weight, bias, *, force_seq_chunk=None):
    """x1, x2: (B, N, E) float32; weight, bias: (E,) float32 -> (B, N, E)."""
    B, N, E = x1.shape
    w2 = weight.reshape(1, E).astype(x1.dtype)
    b2 = bias.reshape(1, E).astype(x1.dtype)

    vmem_limit, target_tile, min_steps = _vmem_config()
    itemsize = jnp.dtype(x1.dtype).itemsize
    per_batch = N * E * itemsize
    budget = int(vmem_limit * 0.85)

    if force_seq_chunk is not None or 8 * per_batch > budget:
        tn = force_seq_chunk if force_seq_chunk is not None else _pick_seq_tile(
            N, E, itemsize, target_tile, budget)
        return _add_norm_chunked(x1, x2, w2, b2, tn, vmem_limit)

    tb = _pick_batch_tile(B, per_batch, target_tile, budget, min_steps)
    return _add_norm_fused(x1, x2, w2, b2, tb, vmem_limit)


# --------------------------------------------------------------------------- #
# Reference + self-test
# --------------------------------------------------------------------------- #
def _reference(x1, x2, weight, bias):
    added = x1 + x2
    mean = jnp.mean(added, axis=1, keepdims=True)
    var = jnp.mean((added - mean) ** 2, axis=1, keepdims=True)
    normed = (added - mean) / jnp.sqrt(var + _EPS)
    return normed * weight[None, None, :] + bias[None, None, :]


if __name__ == "__main__":
    key = jax.random.PRNGKey(0)

    # --- fused path: small shapes consistent with the module (batch=2, seq=8, emb=32)
    B, N, E = 2, 8, 32
    k1, k2 = jax.random.split(key)
    x1 = jax.random.normal(k1, (B, N, E), dtype=jnp.float32)
    x2 = jax.random.normal(k2, (B, N, E), dtype=jnp.float32)
    weight = 1.0 + 0.01 * jnp.arange(E, dtype=jnp.float32)
    bias = 0.1 * jnp.arange(E, dtype=jnp.float32) - 1.0

    out = jax.block_until_ready(add_and_normalize(x1, x2, weight, bias))
    ref = _reference(x1, x2, weight, bias)
    assert out.shape == (B, N, E)
    assert jnp.allclose(out, ref, atol=2e-4, rtol=2e-4), "fused path mismatch vs reference"

    # --- chunked (large-N fallback) path, exercised with a small forced chunk size
    B2, N2, E2 = 2, 64, 128
    k3, k4 = jax.random.split(k1)
    y1 = jax.random.normal(k3, (B2, N2, E2), dtype=jnp.float32)
    y2 = jax.random.normal(k4, (B2, N2, E2), dtype=jnp.float32)
    w2 = 1.0 + 0.01 * jnp.arange(E2, dtype=jnp.float32)
    b2 = 0.1 * jnp.arange(E2, dtype=jnp.float32) - 1.0

    out2 = jax.block_until_ready(
        add_and_normalize(y1, y2, w2, b2, force_seq_chunk=16))
    ref2 = _reference(y1, y2, w2, b2)
    assert out2.shape == (B2, N2, E2)
    assert jnp.allclose(out2, ref2, atol=2e-4, rtol=2e-4), "chunked path mismatch vs reference"

    print("KERNEL_OK")
</pallas_src>

<mosaic_0001>
module attributes {stable_mosaic.version = 11 : i64} {
  func.func @_fused_kernel(%arg0: i32, %arg1: memref<1x8x32xf32, #tpu.memory_space<vmem>>, %arg2: memref<1x8x32xf32, #tpu.memory_space<vmem>>, %arg3: memref<1x32xf32, #tpu.memory_space<vmem>>, %arg4: memref<1x32xf32, #tpu.memory_space<vmem>>, %arg5: memref<1x8x32xf32, #tpu.memory_space<vmem>>) attributes {dimension_semantics = [#tpu.dimension_semantics<parallel>], iteration_bounds = array<i64: 2>, scalar_prefetch = 0 : i64, scratch_operands = 0 : i64, tpu.core_type = #tpu.core_type<tc>, window_params = [{transform_indices = @transform_0, window_bounds = array<i64: 1, 8, 32>}, {transform_indices = @transform_1, window_bounds = array<i64: 1, 8, 32>}, {pipeline_mode = #tpu.pipeline_mode<synchronous>, transform_indices = @transform_2, window_bounds = array<i64: 1, 32>}, {pipeline_mode = #tpu.pipeline_mode<synchronous>, transform_indices = @transform_3, window_bounds = array<i64: 1, 32>}, {transform_indices = @transform_4, window_bounds = array<i64: 1, 8, 32>}]} {
    %c0 = arith.constant 0 : index
    %c0_0 = arith.constant 0 : index
    %c0_1 = arith.constant 0 : index
    %0 = vector.load %arg1[%c0, %c0_0, %c0_1] : memref<1x8x32xf32, #tpu.memory_space<vmem>>, vector<1x8x32xf32>
    %c0_2 = arith.constant 0 : index
    %c0_3 = arith.constant 0 : index
    %c0_4 = arith.constant 0 : index
    %1 = vector.load %arg2[%c0_2, %c0_3, %c0_4] : memref<1x8x32xf32, #tpu.memory_space<vmem>>, vector<1x8x32xf32>
    %2 = arith.addf %0, %1 : vector<1x8x32xf32>
    %cst = arith.constant dense<0.000000e+00> : vector<1x32xf32>
    %3 = vector.multi_reduction <add>, %2, %cst [1] : vector<1x8x32xf32> to vector<1x32xf32>
    %4 = vector.shape_cast %3 : vector<1x32xf32> to vector<1x1x32xf32>
    %cst_5 = arith.constant 1.250000e-01 : f32
    %5 = vector.broadcast %cst_5 : f32 to vector<1x1x32xf32>
    %6 = arith.mulf %4, %5 : vector<1x1x32xf32>
    %7 = arith.mulf %2, %2 : vector<1x8x32xf32>
    %cst_6 = arith.constant dense<0.000000e+00> : vector<1x32xf32>
    %8 = vector.multi_reduction <add>, %7, %cst_6 [1] : vector<1x8x32xf32> to vector<1x32xf32>
    %9 = vector.shape_cast %8 : vector<1x32xf32> to vector<1x1x32xf32>
    %cst_7 = arith.constant 1.250000e-01 : f32
    %10 = vector.broadcast %cst_7 : f32 to vector<1x1x32xf32>
    %11 = arith.mulf %9, %10 : vector<1x1x32xf32>
    %12 = arith.mulf %6, %6 : vector<1x1x32xf32>
    %13 = arith.subf %11, %12 : vector<1x1x32xf32>
    %cst_8 = arith.constant 0.000000e+00 : f32
    %14 = vector.broadcast %cst_8 : f32 to vector<1x1x32xf32>
    %15 = arith.maximumf %13, %14 : vector<1x1x32xf32>
    %cst_9 = arith.constant 9.99999974E-6 : f32
    %16 = vector.broadcast %cst_9 : f32 to vector<1x1x32xf32>
    %17 = arith.addf %15, %16 : vector<1x1x32xf32>
    %18 = math.rsqrt %17 : vector<1x1x32xf32>
    %c0_10 = arith.constant 0 : index
    %c0_11 = arith.constant 0 : index
    %19 = vector.load %arg3[%c0_10, %c0_11] : memref<1x32xf32, #tpu.memory_space<vmem>>, vector<1x32xf32>
    %20 = vector.shape_cast %19 : vector<1x32xf32> to vector<1x1x32xf32>
    %21 = arith.mulf %18, %20 : vector<1x1x32xf32>
    %c0_12 = arith.constant 0 : index
    %c0_13 = arith.constant 0 : index
    %22 = vector.load %arg4[%c0_12, %c0_13] : memref<1x32xf32, #tpu.memory_space<vmem>>, vector<1x32xf32>
    %23 = vector.shape_cast %22 : vector<1x32xf32> to vector<1x1x32xf32>
    %24 = arith.mulf %6, %21 : vector<1x1x32xf32>
    %25 = arith.subf %23, %24 : vector<1x1x32xf32>
    %26 = vector.broadcast %21 : vector<1x1x32xf32> to vector<1x8x32xf32>
    %27 = arith.mulf %2, %26 : vector<1x8x32xf32>
    %28 = vector.broadcast %25 : vector<1x1x32xf32> to vector<1x8x32xf32>
    %29 = arith.addf %27, %28 : vector<1x8x32xf32>
    %c0_14 = arith.constant 0 : index
    %c0_15 = arith.constant 0 : index
    %c0_16 = arith.constant 0 : index
    %30 = vector.load %arg5[%c0_14, %c0_15, %c0_16] : memref<1x8x32xf32, #tpu.memory_space<vmem>>, vector<1x8x32xf32>
    tpu.vector_store %arg5[%c0_14, %c0_15, %c0_16], %29 {strides = array<i32>} : memref<1x8x32xf32, #tpu.memory_space<vmem>>, vector<1x8x32xf32>,
    return
  }
  func.func @transform_0(%arg0: i32) -> (i32, i32, i32) {
    %c0_i32 = arith.constant 0 : i32
    %c0_i32_0 = arith.constant 0 : i32
    %c0_i32_1 = arith.constant 0 : i32
    return %arg0, %c0_i32, %c0_i32_0 : i32, i32, i32
  }
  func.func @transform_1(%arg0: i32) -> (i32, i32, i32) {
    %c0_i32 = arith.constant 0 : i32
    %c0_i32_0 = arith.constant 0 : i32
    %c0_i32_1 = arith.constant 0 : i32
    return %arg0, %c0_i32, %c0_i32_0 : i32, i32, i32
  }
  func.func @transform_2(%arg0: i32) -> (i32, i32) {
    %c0_i32 = arith.constant 0 : i32
    %c0_i32_0 = arith.constant 0 : i32
    %c0_i32_1 = arith.constant 0 : i32
    return %c0_i32, %c0_i32_0 : i32, i32
  }
  func.func @transform_3(%arg0: i32) -> (i32, i32) {
    %c0_i32 = arith.constant 0 : i32
    %c0_i32_0 = arith.constant 0 : i32
    %c0_i32_1 = arith.constant 0 : i32
    return %c0_i32, %c0_i32_0 : i32, i32
  }
  func.func @transform_4(%arg0: i32) -> (i32, i32, i32) {
    %c0_i32 = arith.constant 0 : i32
    %c0_i32_0 = arith.constant 0 : i32
    %c0_i32_1 = arith.constant 0 : i32
    return %arg0, %c0_i32, %c0_i32_0 : i32, i32, i32
  }
}

</mosaic_0001>

<bundles_post_ra>
// kernel: tpu_custom_call.1
= control target key start
LH: loop header
LB: loop body
LE: loop exit
PB: predicated region body
PF: predicated region fallthrough
CT: control target
= control target key end

     0   :  { %s809_s0 = inlined_call_operand.hbm [shape: f32[2,8,32], index: 0, kind: input, shape index: {}]   ;;  %s810_s1 = inlined_call_operand.hbm [shape: f32[2,8,32], index: 1, kind: input, shape index: {}]   ;;  %s811_s2 = inlined_call_operand.vmem [shape: f32[1,32], index: 2, kind: input, shape index: {}]   ;;  %s812_s3 = inlined_call_operand.vmem [shape: f32[1,32], index: 3, kind: input, shape index: {}]   ;;  %s813_s4 = inlined_call_operand.hbm [shape: f32[2,8,32], index: 4, kind: output, shape index: {}]  }
   0x1   :  { %814 = sst [smem:[#allocation11_spill]] %s809_s0 }
   0x2   :  { %9 = vsyncpa [#allocation3], 0 }
   0x3   :  { %11 = vsyncpa [#allocation3 + $0x1], 0 }
   0x4   :  { %12 = vsyncpa [#allocation6], 0 }
   0x5   :  { %14 = vsyncpa [#allocation6 + $0x1], 0 }
   0x6   :  { %15 = vsyncpa [#allocation4], 0 }
   0x7   :  { %17 = vsyncpa [#allocation4 + $0x1], 0  ;;  %s635_s15 = smov 0   ;;  %s637_s16 = smov 0  }
   0x8   :  { %s639_s17 = smov 0   ;;  %s641_s18 = smov 0  }
   0x9 LB: > { %s656_s19 = sadd.s32 4294967295, %s608_s18   ;;  %s410_s20 = sadd.s32 4294967294, %s608_s18   ;;  %s608_s18 = sphi %s641_s18, %s826_s18   ;;  %s604_s17 = sphi %s639_s17, %s825_s17   ;;  %s600_s16 = sphi %s637_s16, %s824_s16   ;;  %s596_s15 = sphi %s635_s15, %s823_s15  }
   0xa   : > { %s660_s21 = sadd.s32 1, %s608_s18   ;;  %s30_s22 = sadd.s32 1, %s604_s17 }
   0xb   : > { %s27_s23 = ssub.s32 %s608_s18, %s660_s21  ;;  %p37_p0 = scmp.ne.s32.totalorder %s604_s17, %s600_s16 }
   0xc   : > { %p28_p1 = scmp.eq.s32.totalorder %s27_s23, 0  ;;  %p38_p2 = scmp.eq.s32.totalorder %s608_s18, 0 }
   0xd   : > { %p43_p3 = scmp.ne.s32.totalorder %s600_s16, %s596_s15  ;;  %p44_p4 = scmp.eq.s32.totalorder %s656_s19, 0 }
   0xe   : > { %s672_s24 = scalar_select %p28_p1, %s604_s17, %s30_s22  }
   0xf   : > { %p674_p5 = por %p38_p2, %p37_p0  ;;  %p678_p6 = por %p44_p4, %p43_p3 }
  0x10   : > { %p135_p7 = scmp.eq.s32.totalorder %s656_s19, 1  ;;  %p141_p8 = scmp.eq.s32.totalorder %s410_s20, 1 }
  0x11   : > { %p442_p10 = scmp.lt.s32.totalorder %s608_s18, 2  ;;  %s694_s29 = sand.u32 1, %s604_s17  }
  0x12   : > { %p685_p11 = por %p135_p7, %p37_p0  ;;  %p689_p12 = por %p141_p8, %p43_p3 }
  0x13   : > { %s414_s30 = sshll.u32 %s608_s18, 3  ;;  %s413_s5 = sshll.u32 %s694_s29, 3 }
  0x14   : > { %s819_s0 = sld [smem:[#allocation11_spill]]  ;;  %s171_s10 = scalar_lea.vmem [#allocation2], %s413_s5 }
  0x15   : > { %s179_s11 = sshll.u32 %s171_s10, 4  ;;  %p703_p13 = pnand %p442_p10, %p674_p5  ;;  %s180_s11 = int_to_ptr.vmem [resolvable:$true] %s179_s11 }
  0x16   : > { %p417_p0 = scmp.ge.s32.totalorder %s608_s18, 1  ;;  %p203_p1 = scmp.lt.s32.totalorder %s608_s18, 3 }
  0x17   : > { %s168_s13 = scalar_lea.sflag [#allocation3], %s694_s29  ;;  %p482_p3 = pneg %p703_p13 }
  0x1a   : > { %s175_s8 = scalar_lea.hbm %s819_s0, %s414_s30  ;;  %s485_s25 = scalar_lea.hbm %s819_s0, 16 }
  0x1b   : > { %s177_s9 = sshll.u32 %s175_s8, 4  ;;  %s178_s9 = int_to_ptr.hbm [resolvable:$true] %s177_s9 }
  0x1c   : > { %s478_s14 = sshra.s32 %s178_s9, 4  ;;  %s479_s14 = int_to_ptr.hbm [resolvable:$true] %s478_s14 }
  0x1d   : > { %s480_s20 = scalar_lea.hbm %s479_s14, 8  ;;  %p486_p5 = scmp.lt.s32.totalorder %s479_s14, %s819_s0 }
  0x1e   : > { %p481_p2 = scmp.ne.s32.totalorder %s479_s14, %s480_s20  ;;  %p487_p8 = scmp.lt.s32.totalorder %s485_s25, %s480_s20 }
  0x20   : > { %p483_p4 = pnand %p482_p3, %p481_p2  ;;  %p488_p10 = por %p487_p8, %p486_p5 }
  0x22   : > { %p484_p7 = pneg %p483_p4 }
  0x24   : > { %p489_p9 = pnand %p488_p10, %p484_p7 }
  0x26   : > { %492 = shalt.err (!%p489_p9)
}
  0x27   : > { %434 = dma.hbm_to_vmem [thread:$0]  (!%p703_p13), %s178_s9, 128, %s180_s11, %s168_s13  }
  0x28   : > { %p727_p2 = pnand %p417_p0, %p203_p1  ;;  %s194_s14 = scalar_lea.hbm %s810_s1, %s414_s30 }
  0x29   : > { %s196_s20 = sshll.u32 %s194_s14, 4  ;;  %s190_s23 = scalar_lea.vmem [#allocation5], %s413_s5  ;;  %s197_s20 = int_to_ptr.hbm [resolvable:$true] %s196_s20 }
  0x2a   : > { %s198_s25 = sshll.u32 %s190_s23, 4  ;;  %s187_s6 = scalar_lea.sflag [#allocation6], %s694_s29  ;;  %s199_s25 = int_to_ptr.vmem [resolvable:$true] %s198_s25 }
  0x2b   : > { %s508_s7 = sshra.s32 %s197_s20, 4  ;;  %s515_s13 = scalar_lea.hbm %s810_s1, 16  ;;  %s509_s7 = int_to_ptr.hbm [resolvable:$true] %s508_s7 }
  0x2c   : > { %s510_s0 = scalar_lea.hbm %s509_s7, 8  ;;  %p516_p4 = scmp.lt.s32.totalorder %s509_s7, %s810_s1 }
  0x2d   : > { %p511_p9 = scmp.ne.s32.totalorder %s509_s7, %s510_s0  ;;  %p517_p7 = scmp.lt.s32.totalorder %s515_s13, %s510_s0 }
  0x2f   : > { %p513_p0 = pnand %p511_p9, %p482_p3  ;;  %p518_p5 = por %p517_p7, %p516_p4 }
  0x31   : > { %p514_p1 = pneg %p513_p0 }
  0x33   : > { %p519_p8 = pnand %p518_p5, %p514_p1 }
  0x35   : > { %522 = shalt.err (!%p519_p8)
}
  0x36   : > { %437 = dma.hbm_to_vmem [thread:$0]  (!%p703_p13), %s197_s20, 128, %s199_s25, %s187_s6  }
  0x37   : > { %207 = sbr.rel (%p727_p2) target bundleno = 120 (0x78), region = 36  ;;  %s749_s29 = sand.u32 (!%p727_p2), 1, %s600_s16  }
  0x38   : > { %s752_s5 = sshll.u32 (!%p727_p2), %s749_s29, 3  ;;  %s210_s22 = scalar_lea.sflag (!%p727_p2), [#allocation3], %s749_s29 }
  0x39   : > { %s213_s0 = scalar_lea.vmem (!%p727_p2), [#allocation2], %s752_s5 }
  0x3c   : > { %583 = dma.done.wait (%p678_p6), %s210_s22, 128  }
  0x3d   : > { %585 = vsyncadd (%p678_p6), %s210_s22, 4294967168  ;;  %s220_s12 = scalar_lea.sflag [#allocation6], %s749_s29  ;;  %s223_s8 = scalar_lea.vmem [#allocation5], %s752_s5 }
  0x3e   : > { %587 = dma.done.wait (%p678_p6), %s220_s12, 128  }
  0x3f   : > { %589 = vsyncadd (%p678_p6), %s220_s12, 4294967168  ;;  %v254_v0 = vld [vmem:[%s213_s0] sm:$0xff]  ;;  %v255_v1 = vld [vmem:[%s223_s8] sm:$0xff]  ;;  %vm257_vm0 = vcmask 261120   ;;  %s422_s20 = sshll.u32 %s656_s19, 3  ;;  %s253_s11 = scalar_lea.vmem [#allocation7], %s752_s5 }
  0x40   : > { %v256_v2 = vadd.f32 %v255_v1, %v254_v0  ;;  %v289_v30 = vld [vmem:[%s811_s2] sm:$0x1]  ;;  %s312_s9 = scalar_lea.hbm %s813_s4, %s422_s20  ;;  %s314_s13 = sshll.u32 %s253_s11, 4  ;;  %s315_s13 = int_to_ptr.vmem [resolvable:$true] %s314_s13 }
  0x41   : > { %v291_v33 = vld [vmem:[%s812_s3] sm:$0x1]  ;;  %s316_s10 = sshll.u32 %s312_s9, 4  ;;  %s302_s19 = scalar_lea.sflag [#allocation4], %s749_s29  ;;  %s317_s10 = int_to_ptr.hbm [resolvable:$true] %s316_s10 }
  0x42   : > { %v258_v3 = vsel %vm257_vm0, %v256_v2, 0.0  ;;  %v266_v4 = vmul.f32 %v256_v2, %v256_v2  ;;  %s552_s30 = sshra.s32 %s317_s10, 4  ;;  %s558_s5 = scalar_lea.hbm %s813_s4, 16  ;;  %s553_s30 = int_to_ptr.hbm [resolvable:$true] %s552_s30 }
  0x43   : > { %v259_v5 = vrot.slane %v258_v3, 4  ;;  %s554_s22 = scalar_lea.hbm %s553_s30, 8  ;;  %p559_p10 = scmp.lt.s32.totalorder %s553_s30, %s813_s4 }
  0x44   : > { %v267_v6 = vsel %vm257_vm0, %v266_v4, 0.0  ;;  %p555_p6 = scmp.ne.s32.totalorder %s553_s30, %s554_s22  ;;  %p560_p2 = scmp.lt.s32.totalorder %s558_s5, %s554_s22 }
  0x45   : > { %v260_v7 = vadd.f32 %v259_v5, %v258_v3  ;;  %v268_v8 = vrot.slane %v267_v6, 4 }
  0x46   : > { %p556_p13 = pnand %p555_p6, %p685_p11  ;;  %p561_p9 = por %p560_p2, %p559_p10 }
  0x47   : > { %v261_v9 = vrot.slane %v260_v7, 2  ;;  %v269_v10 = vadd.f32 %v268_v8, %v267_v6 }
  0x48   : > { %p557_p3 = pneg %p556_p13 }
  0x49   : > { %v262_v11 = vadd.f32 %v261_v9, %v260_v7  ;;  %v270_v12 = vrot.slane %v269_v10, 2 }
  0x4a   : > { %p562_p0 = pnand %p561_p9, %p557_p3 }
  0x4b   : > { %v263_v13 = vrot.slane %v262_v11, 1  ;;  %v271_v14 = vadd.f32 %v270_v12, %v269_v10 }
  0x4d   : > { %v264_v15 = vadd.f32 %v263_v13, %v262_v11  ;;  %v272_v16 = vrot.slane %v271_v14, 1 }
  0x4f   : > { %v265_v17 = vmul.f32 0.125, %v264_v15  ;;  %v273_v18 = vadd.f32 %v272_v16, %v271_v14 }
  0x51   : > { %v274_v19 = vmul.f32 0.125, %v273_v18  ;;  %v275_v20 = vmul.f32 %v265_v17, %v265_v17 }
  0x53   : > { %v276_v21 = vsub.f32 %v274_v19, %v275_v20 }
  0x55   : > { %v277_v22 = vmax.f32 %v276_v21, 0.0 }
  0x57   : > { %v278_v23 = vadd.f32 1e-05, %v277_v22 }
  0x59   : > { %476 = vrsqrt.f32 %v278_v23  ;;  %vm285_vm1 = vweird.f32 %v278_v23 }
  0x5f   : > { %v477_v24 = vpop.eup %476 }
  0x60   : > { %v280_v25 = vmul.f32 %v477_v24, %v278_v23  ;;  %vm286_vm2 = vweird.f32 %v477_v24 }
  0x61   : > { %vm287_vm3 = vmor %vm285_vm1, %vm286_vm2 }
  0x62   : > { %v281_v26 = vmul.f32 %v477_v24, %v280_v25 }
  0x64   : > { %v282_v27 = vmul.f32 0.5, %v281_v26 }
  0x66   : > { %v283_v28 = vsub.f32 1.5, %v282_v27 }
  0x68   : > { %v284_v29 = vmul.f32 %v477_v24, %v283_v28 }
  0x6a   : > { %v288_v31 = vsel %vm287_vm3, %v477_v24, %v284_v29 }
  0x6b   : > { %v290_v32 = vmul.f32 %v289_v30, %v288_v31 }
  0x6d   : > { %v292_v34 = vmul.f32 %v290_v32, %v265_v17  ;;  %v294_v35 = vperm.slane %v290_v32, 0 }
  0x6f   : > { %v293_v36 = vsub.f32 %v291_v33, %v292_v34  ;;  %v295_v37 = vmul.f32 %v294_v35, %v256_v2 }
  0x71   : > { %v297_v38 = vperm.slane %v293_v36, 0 }
  0x73   : > { %v299_v39 = vadd.f32 %v297_v38, %v295_v37 }
  0x75   : > { %300 = vst.msk [vmem:[%s253_s11] sm:$0xff] %vm257_vm0, %v299_v39 }
  0x76   : > { %565 = shalt.err (!%p562_p0)
}
  0x77   : > { %429 = dma.vmem_to_hbm [thread:$0]  (%p685_p11), %s315_s13, 128, %s317_s10, %s302_s19  }
  0x78 PF: > { %s328_s29 = sand.u32 1, %s596_s15   ;;  %p822_p1 = scmp.ge.s32.totalorder %s608_s18, 2 }
  0x79   : > { %s329_s14 = scalar_lea.sflag [#allocation4], %s328_s29 }
  0x7a   : > { %p439_p4 = pnand %p822_p1, %p689_p12 }
  0x7c   : > { %p440_p7 = pneg %p439_p4 }
  0x7e   : > { %591 = dma.done.wait (%p440_p7), %s329_s14, 128  }
  0x7f   : > { %593 = vsyncadd (%p440_p7), %s329_s14, 4294967168  ;;  %p20_p5 = scmp.ge.s32.totalorder %s660_s21, 4   ;;  %s823_s15 = smov %s600_s16 }
  0x80   : > { %s824_s16 = smov %s604_s17  ;;  %s825_s17 = smov %s672_s24 }
  0x81   : > { %s826_s18 = smov %s660_s21  ;;  %22 = sbr.rel (!%p20_p5) target bundleno = 9 (0x9), region = 94 }
  0x86   :  { %335 = vsyncpa [#allocation3], 1 }
  0x87   :  { %337 = vsyncpa [#allocation3 + $0x1], 1 }
  0x88   :  { %338 = vsyncpa [#allocation6], 1 }
  0x89   :  { %340 = vsyncpa [#allocation6 + $0x1], 1 }
  0x8a   :  { %341 = vsyncpa [#allocation4], 1 }
  0x8b   :  { %343 = vsyncpa [#allocation4 + $0x1], 1 }

</bundles_post_ra>
